<compile_context>
chip_gen: v5e
topology: v5e:2x2
jax: 0.10.0
libtpu: 0.0.40
codegen_flags: <defaults>
</compile_context>

<pallas_src>
import functools

import jax
import jax.numpy as jnp
from jax import lax
from jax.experimental import pallas as pl
from jax.experimental.pallas import tpu as pltpu

NEG_INF = -1e9          # Python float literal (never captured as a jax array)
LEAKY_SLOPE = 0.2       # PyG GATConv default negative_slope
HEAD_BLOCK = 128        # each head's augmented-weight slice owns one lane tile


# ---------------------------------------------------------------------------
# In-kernel per-head attention weights.  feat: (N, heads*128) augmented
# features; blk: this head's 128-aligned lane offset; d: per-head feature dim
# (the two attention scalars sit at lanes blk+d and blk+d+1); adj_bias: (N, N)
# additive 0/-1e9 mask; ones_col: hoisted (N, 1) ones.
# ---------------------------------------------------------------------------
def _head_alpha(feat, blk, d, adj_bias, ones_col):
    s_src = feat[:, blk + d:blk + d + 1]          # (N, 1)
    s_dst = feat[:, blk + d + 1:blk + d + 2]      # (N, 1)
    # src_b[i, j] = s_src[j]  (rank-1 outer product: lane broadcast of src scores)
    src_b = lax.dot_general(
        ones_col, s_src,
        dimension_numbers=(((1,), (1,)), ((), ())),
        preferred_element_type=jnp.float32)
    scores = s_dst + src_b                                        # (N, N)
    scores = jnp.where(scores > 0, scores, LEAKY_SLOPE * scores)  # LeakyReLU(0.2)
    scores = scores + adj_bias                                    # additive mask
    # Self-loops (baked into adj_bias) keep every row max finite, so masked
    # entries underflow to exactly 0 after the exp.
    m = jnp.max(scores, axis=-1, keepdims=True)
    p = jnp.exp(scores - m)
    denom = jnp.sum(p, axis=-1, keepdims=True)
    inv = pl.reciprocal(denom, approx=True)                       # EUP slot
    inv = inv * (2.0 - denom * inv)                               # Newton step
    return p * inv                                                # (N, N) f32


# ---------------------------------------------------------------------------
# Pallas kernel: whole forward pass (small graph batch -> single VMEM block).
# ---------------------------------------------------------------------------
def gat_model_kernel(x_ref, adj_bias_ref, pool_ref,
                     w1a_ref, b1_ref, w2a_ref, b2_ref,
                     out_ref, *, heads, hidden_dim, output_dim):
    n = x_ref.shape[0]
    adj_bias = adj_bias_ref[...].astype(jnp.float32)   # one cast, reused 4x
    ones_col = jnp.ones((n, 1), jnp.float32)           # hoisted, reused 4x

    # ----- conv1 (concat=True) + bias + ReLU ---------------------------------
    feat1 = jnp.dot(x_ref[...], w1a_ref[...], preferred_element_type=jnp.float32)
    outs1 = []
    for hh in range(heads):
        blk = hh * HEAD_BLOCK
        h = feat1[:, blk:blk + hidden_dim]              # 128-aligned lane start
        alpha = _head_alpha(feat1, blk, hidden_dim, adj_bias, ones_col)
        outs1.append(jnp.dot(alpha.astype(jnp.bfloat16), h.astype(jnp.bfloat16),
                             preferred_element_type=jnp.float32))
    h1 = jnp.concatenate(outs1, axis=-1)                # (N, heads*hidden) = 32 lanes
    h1 = jnp.maximum(h1 + b1_ref[...], 0.0)
    # F.dropout(..., training=False) is the identity.
    # TODO(synk): training-mode (stochastic) dropout not implemented in-kernel.

    # ----- conv2 (concat=False -> mean over heads), heads fused in one matmul --
    feat2 = jnp.dot(h1, w2a_ref[...], preferred_element_type=jnp.float32)
    alphas2, feats2 = [], []
    for hh in range(heads):
        blk = hh * HEAD_BLOCK
        feats2.append(feat2[:, blk:blk + output_dim])   # 128-aligned lane start
        alphas2.append(_head_alpha(feat2, blk, output_dim, adj_bias, ones_col))
    alpha_cat = jnp.concatenate(alphas2, axis=-1).astype(jnp.bfloat16)  # (N, heads*N)
    h_stack = jnp.concatenate(feats2, axis=0).astype(jnp.bfloat16)      # (heads*N, D)
    h2 = jnp.dot(alpha_cat, h_stack, preferred_element_type=jnp.float32)
    h2 = h2 * (1.0 / heads) + b2_ref[...]

    # ----- global_mean_pool + ReLU --------------------------------------------
    pooled = jnp.dot(pool_ref[...], h2, preferred_element_type=jnp.float32)
    out_ref[...] = jnp.maximum(pooled, 0.0)


# ---------------------------------------------------------------------------
# Wrapper glue: scatter-built adjacency bias, pooling matrix, 128-lane-padded
# augmented weights (a_src/a_dst folded into W), and the pallas_call.
# ---------------------------------------------------------------------------
def _build_adj(edge_index, n):
    """adj[i, j] = True iff edge j -> i exists or i == j (add_self_loops=True)."""
    src, dst = edge_index[0], edge_index[1]
    adj = jnp.zeros((n, n), jnp.bool_).at[dst, src].set(True)   # scatter, O(E)
    ids = jnp.arange(n)
    return adj | (ids[:, None] == ids[None, :])


def _build_adj_bias(edge_index, n):
    """Additive mask: 0 where an edge (or self-loop) exists, else NEG_INF."""
    return jnp.where(_build_adj(edge_index, n), 0.0, NEG_INF).astype(jnp.bfloat16)


def _build_pool(batch, num_graphs):
    onehot = (batch[None, :] == jnp.arange(num_graphs)[:, None]).astype(jnp.float32)
    counts = jnp.maximum(jnp.sum(onehot, axis=1, keepdims=True), 1.0)
    return onehot / counts                                         # (G, N)


def _augment_weight_padded(w, a_src, a_dst, heads, out_dim):
    """(in_dim, heads*128): head h's block = [W_h | W_h@a_src_h | W_h@a_dst_h | 0...]."""
    assert out_dim + 2 <= HEAD_BLOCK
    in_dim = w.shape[0]
    wa = jnp.zeros((in_dim, heads * HEAD_BLOCK), w.dtype)
    for hh in range(heads):
        w_h = w[:, hh * out_dim:(hh + 1) * out_dim]
        blk = hh * HEAD_BLOCK
        wa = wa.at[:, blk:blk + out_dim].set(w_h)
        wa = wa.at[:, blk + out_dim].set(w_h @ a_src[hh])
        wa = wa.at[:, blk + out_dim + 1].set(w_h @ a_dst[hh])
    return wa


def gat_model_forward(x, edge_index, batch, params, *, num_graphs,
                      heads, hidden_dim, output_dim):
    n = x.shape[0]
    adj_bias = _build_adj_bias(edge_index, n)                      # bf16 additive mask
    pool = _build_pool(batch, num_graphs)

    w1a = _augment_weight_padded(params["w1"], params["asrc1"], params["adst1"],
                                 heads, hidden_dim)
    w2a = _augment_weight_padded(params["w2"], params["asrc2"], params["adst2"],
                                 heads, output_dim)

    kernel = functools.partial(gat_model_kernel, heads=heads,
                               hidden_dim=hidden_dim, output_dim=output_dim)
    vmem = pl.BlockSpec(memory_space=pltpu.MemorySpace.VMEM)
    # TODO(synk): for a real workload with many graph batches, add a leading
    # "parallel" grid axis over batches (amortizes per-call overhead; 2x on v7x).
    return pl.pallas_call(
        kernel,
        out_shape=jax.ShapeDtypeStruct((num_graphs, output_dim), jnp.float32),
        in_specs=[vmem] * 7,
        out_specs=vmem,
    )(x, adj_bias, pool, w1a, params["b1"], w2a, params["b2"])


# ---------------------------------------------------------------------------
# Pure-JAX reference (unaugmented weights, exact division, full f32).
# ---------------------------------------------------------------------------
def _gat_layer_ref(x, adj, w, a_src, a_dst, heads, out_dim, concat):
    feat = x @ w
    outs = []
    for hh in range(heads):
        h = feat[:, hh * out_dim:(hh + 1) * out_dim]
        s_src = jnp.sum(h * a_src[hh][None, :], axis=-1)
        s_dst = jnp.sum(h * a_dst[hh][None, :], axis=-1)
        sc = s_dst[:, None] + s_src[None, :]
        sc = jnp.where(sc > 0, sc, LEAKY_SLOPE * sc)
        sc = jnp.where(adj, sc, NEG_INF)
        m = jnp.max(sc, axis=-1, keepdims=True)
        p = jnp.exp(sc - m)
        p = jnp.where(adj, p, 0.0)
        alpha = p / jnp.sum(p, axis=-1, keepdims=True)
        outs.append(alpha @ h)
    if concat:
        return jnp.concatenate(outs, axis=-1)
    return sum(outs) / heads


def gat_model_reference(x, edge_index, batch, params, *, num_graphs,
                        heads, hidden_dim, output_dim):
    n = x.shape[0]
    adj = _build_adj(edge_index, n)
    pool = _build_pool(batch, num_graphs)
    h1 = _gat_layer_ref(x, adj, params["w1"], params["asrc1"], params["adst1"],
                        heads, hidden_dim, concat=True) + params["b1"]
    h1 = jnp.maximum(h1, 0.0)
    h2 = _gat_layer_ref(h1, adj, params["w2"], params["asrc2"], params["adst2"],
                        heads, output_dim, concat=False) + params["b2"]
    return jnp.maximum(pool @ h2, 0.0)


def init_params(key, input_dim, hidden_dim, output_dim, heads):
    ks = jax.random.split(key, 8)
    s1 = (2.0 / (input_dim + hidden_dim)) ** 0.5
    s2 = (2.0 / (heads * hidden_dim + output_dim)) ** 0.5
    return {
        "w1": jax.random.normal(ks[0], (input_dim, heads * hidden_dim), jnp.float32) * s1,
        "asrc1": jax.random.normal(ks[1], (heads, hidden_dim), jnp.float32) * 0.1,
        "adst1": jax.random.normal(ks[2], (heads, hidden_dim), jnp.float32) * 0.1,
        "b1": jnp.zeros((1, heads * hidden_dim), jnp.float32),
        "w2": jax.random.normal(ks[3], (heads * hidden_dim, heads * output_dim), jnp.float32) * s2,
        "asrc2": jax.random.normal(ks[4], (heads, output_dim), jnp.float32) * 0.1,
        "adst2": jax.random.normal(ks[5], (heads, output_dim), jnp.float32) * 0.1,
        "b2": jnp.zeros((1, output_dim), jnp.float32),
    }


if __name__ == "__main__":
    INPUT_DIM, HIDDEN_DIM, OUTPUT_DIM, HEADS = 8, 16, 8, 2
    N_NODES, NUM_GRAPHS = 16, 2

    key = jax.random.PRNGKey(0)
    k_x, k_p = jax.random.split(key)

    x = jax.random.normal(k_x, (N_NODES, INPUT_DIM), jnp.float32)
    # Two graphs of 8 nodes each: a directed ring + one chord per graph.
    src = jnp.array([0, 1, 2, 3, 4, 5, 6, 7, 0, 2,
                     8, 9, 10, 11, 12, 13, 14, 15, 8, 10], jnp.int32)
    dst = jnp.array([1, 2, 3, 4, 5, 6, 7, 0, 4, 6,
                     9, 10, 11, 12, 13, 14, 15, 8, 12, 14], jnp.int32)
    edge_index = jnp.stack([src, dst], axis=0)
    batch = jnp.array([0] * 8 + [1] * 8, jnp.int32)

    params = init_params(k_p, INPUT_DIM, HIDDEN_DIM, OUTPUT_DIM, HEADS)

    out = gat_model_forward(x, edge_index, batch, params,
                            num_graphs=NUM_GRAPHS, heads=HEADS,
                            hidden_dim=HIDDEN_DIM, output_dim=OUTPUT_DIM)
    out = jax.block_until_ready(out)

    ref = gat_model_reference(x, edge_index, batch, params,
                              num_graphs=NUM_GRAPHS, heads=HEADS,
                              hidden_dim=HIDDEN_DIM, output_dim=OUTPUT_DIM)
    assert out.shape == (NUM_GRAPHS, OUTPUT_DIM)
    # Tolerance covers bf16 MXU operands in the two attention aggregations plus
    # the approximate-reciprocal (+ Newton step) softmax path.
    assert jnp.allclose(out, ref, atol=2e-2, rtol=2e-2), (
        f"max abs diff {jnp.max(jnp.abs(out - ref))}")

    print("KERNEL_OK")
</pallas_src>

<mosaic_0001>
module attributes {stable_mosaic.version = 11 : i64} {
  func.func @gat_model_kernel(%arg0: memref<16x8xf32, #tpu.memory_space<vmem>>, %arg1: memref<16x16xbf16, #tpu.memory_space<vmem>>, %arg2: memref<2x16xf32, #tpu.memory_space<vmem>>, %arg3: memref<8x256xf32, #tpu.memory_space<vmem>>, %arg4: memref<1x32xf32, #tpu.memory_space<vmem>>, %arg5: memref<32x256xf32, #tpu.memory_space<vmem>>, %arg6: memref<1x8xf32, #tpu.memory_space<vmem>>, %arg7: memref<2x8xf32, #tpu.memory_space<vmem>>) attributes {dimension_semantics = [], scalar_prefetch = 0 : i64, scratch_operands = 0 : i64, tpu.core_type = #tpu.core_type<tc>} {
    %c0 = arith.constant 0 : index
    %c0_0 = arith.constant 0 : index
    %0 = vector.load %arg1[%c0, %c0_0] : memref<16x16xbf16, #tpu.memory_space<vmem>>, vector<16x16xbf16>
    %1 = arith.extf %0 : vector<16x16xbf16> to vector<16x16xf32>
    %cst = arith.constant 1.000000e+00 : f32
    %2 = vector.broadcast %cst : f32 to vector<16x1xf32>
    %c0_1 = arith.constant 0 : index
    %c0_2 = arith.constant 0 : index
    %3 = vector.load %arg0[%c0_1, %c0_2] : memref<16x8xf32, #tpu.memory_space<vmem>>, vector<16x8xf32>
    %c0_3 = arith.constant 0 : index
    %c0_4 = arith.constant 0 : index
    %4 = vector.load %arg3[%c0_3, %c0_4] : memref<8x256xf32, #tpu.memory_space<vmem>>, vector<8x256xf32>
    %cst_5 = arith.constant dense<0.000000e+00> : vector<16x256xf32>
    %5 = tpu.matmul %3, %4, %cst_5 {dimension_numbers = #tpu.dot_dimension_numbers<[1], [0], [0], [1], [0, 0, 1, 1], [], []>} : vector<16x8xf32>, vector<8x256xf32>, vector<16x256xf32> -> vector<16x256xf32>
    %6 = vector.extract_strided_slice %5 {offsets = [0, 0], sizes = [16, 16], strides = [1, 1]} : vector<16x256xf32> to vector<16x16xf32>
    %7 = vector.extract_strided_slice %5 {offsets = [0, 16], sizes = [16, 1], strides = [1, 1]} : vector<16x256xf32> to vector<16x1xf32>
    %8 = vector.extract_strided_slice %5 {offsets = [0, 17], sizes = [16, 1], strides = [1, 1]} : vector<16x256xf32> to vector<16x1xf32>
    %cst_6 = arith.constant dense<0.000000e+00> : vector<16x16xf32>
    %9 = tpu.matmul %2, %7, %cst_6 {dimension_numbers = #tpu.dot_dimension_numbers<[1], [1], [0], [0], [0, 0, 1, 0], [], []>} : vector<16x1xf32>, vector<16x1xf32>, vector<16x16xf32> -> vector<16x16xf32>
    %10 = vector.broadcast %8 : vector<16x1xf32> to vector<16x16xf32>
    %11 = arith.addf %10, %9 : vector<16x16xf32>
    %cst_7 = arith.constant 0.000000e+00 : f32
    %12 = vector.broadcast %cst_7 : f32 to vector<16x16xf32>
    %13 = arith.cmpf ogt, %11, %12 : vector<16x16xf32>
    %cst_8 = arith.constant 2.000000e-01 : f32
    %14 = vector.broadcast %cst_8 : f32 to vector<16x16xf32>
    %15 = arith.mulf %14, %11 : vector<16x16xf32>
    %16 = arith.select %13, %11, %15 : vector<16x16xi1>, vector<16x16xf32>
    %17 = arith.addf %16, %1 : vector<16x16xf32>
    %cst_9 = arith.constant dense<0xFF800000> : vector<16xf32>
    %18 = vector.multi_reduction <maximumf>, %17, %cst_9 [1] : vector<16x16xf32> to vector<16xf32>
    %19 = vector.shape_cast %18 : vector<16xf32> to vector<16x1xf32>
    %20 = vector.broadcast %19 : vector<16x1xf32> to vector<16x16xf32>
    %21 = arith.subf %17, %20 : vector<16x16xf32>
    %22 = math.exp %21 : vector<16x16xf32>
    %cst_10 = arith.constant dense<0.000000e+00> : vector<16xf32>
    %23 = vector.multi_reduction <add>, %22, %cst_10 [1] : vector<16x16xf32> to vector<16xf32>
    %24 = vector.shape_cast %23 : vector<16xf32> to vector<16x1xf32>
    %25 = tpu.reciprocal %24 {approx = true} : vector<16x1xf32> -> vector<16x1xf32>
    %26 = arith.mulf %24, %25 : vector<16x1xf32>
    %cst_11 = arith.constant 2.000000e+00 : f32
    %27 = vector.broadcast %cst_11 : f32 to vector<16x1xf32>
    %28 = arith.subf %27, %26 : vector<16x1xf32>
    %29 = arith.mulf %25, %28 : vector<16x1xf32>
    %30 = vector.broadcast %29 : vector<16x1xf32> to vector<16x16xf32>
    %31 = arith.mulf %22, %30 : vector<16x16xf32>
    %32 = arith.truncf %31 : vector<16x16xf32> to vector<16x16xbf16>
    %33 = arith.truncf %6 : vector<16x16xf32> to vector<16x16xbf16>
    %cst_12 = arith.constant dense<0.000000e+00> : vector<16x16xf32>
    %34 = tpu.matmul %32, %33, %cst_12 {dimension_numbers = #tpu.dot_dimension_numbers<[1], [0], [0], [1], [0, 0, 1, 1], [], []>} : vector<16x16xbf16>, vector<16x16xbf16>, vector<16x16xf32> -> vector<16x16xf32>
    %35 = vector.extract_strided_slice %5 {offsets = [0, 128], sizes = [16, 16], strides = [1, 1]} : vector<16x256xf32> to vector<16x16xf32>
    %36 = vector.extract_strided_slice %5 {offsets = [0, 144], sizes = [16, 1], strides = [1, 1]} : vector<16x256xf32> to vector<16x1xf32>
    %37 = vector.extract_strided_slice %5 {offsets = [0, 145], sizes = [16, 1], strides = [1, 1]} : vector<16x256xf32> to vector<16x1xf32>
    %cst_13 = arith.constant dense<0.000000e+00> : vector<16x16xf32>
    %38 = tpu.matmul %2, %36, %cst_13 {dimension_numbers = #tpu.dot_dimension_numbers<[1], [1], [0], [0], [0, 0, 1, 0], [], []>} : vector<16x1xf32>, vector<16x1xf32>, vector<16x16xf32> -> vector<16x16xf32>
    %39 = vector.broadcast %37 : vector<16x1xf32> to vector<16x16xf32>
    %40 = arith.addf %39, %38 : vector<16x16xf32>
    %cst_14 = arith.constant 0.000000e+00 : f32
    %41 = vector.broadcast %cst_14 : f32 to vector<16x16xf32>
    %42 = arith.cmpf ogt, %40, %41 : vector<16x16xf32>
    %cst_15 = arith.constant 2.000000e-01 : f32
    %43 = vector.broadcast %cst_15 : f32 to vector<16x16xf32>
    %44 = arith.mulf %43, %40 : vector<16x16xf32>
    %45 = arith.select %42, %40, %44 : vector<16x16xi1>, vector<16x16xf32>
    %46 = arith.addf %45, %1 : vector<16x16xf32>
    %cst_16 = arith.constant dense<0xFF800000> : vector<16xf32>
    %47 = vector.multi_reduction <maximumf>, %46, %cst_16 [1] : vector<16x16xf32> to vector<16xf32>
    %48 = vector.shape_cast %47 : vector<16xf32> to vector<16x1xf32>
    %49 = vector.broadcast %48 : vector<16x1xf32> to vector<16x16xf32>
    %50 = arith.subf %46, %49 : vector<16x16xf32>
    %51 = math.exp %50 : vector<16x16xf32>
    %cst_17 = arith.constant dense<0.000000e+00> : vector<16xf32>
    %52 = vector.multi_reduction <add>, %51, %cst_17 [1] : vector<16x16xf32> to vector<16xf32>
    %53 = vector.shape_cast %52 : vector<16xf32> to vector<16x1xf32>
    %54 = tpu.reciprocal %53 {approx = true} : vector<16x1xf32> -> vector<16x1xf32>
    %55 = arith.mulf %53, %54 : vector<16x1xf32>
    %cst_18 = arith.constant 2.000000e+00 : f32
    %56 = vector.broadcast %cst_18 : f32 to vector<16x1xf32>
    %57 = arith.subf %56, %55 : vector<16x1xf32>
    %58 = arith.mulf %54, %57 : vector<16x1xf32>
    %59 = vector.broadcast %58 : vector<16x1xf32> to vector<16x16xf32>
    %60 = arith.mulf %51, %59 : vector<16x16xf32>
    %61 = arith.truncf %60 : vector<16x16xf32> to vector<16x16xbf16>
    %62 = arith.truncf %35 : vector<16x16xf32> to vector<16x16xbf16>
    %cst_19 = arith.constant dense<0.000000e+00> : vector<16x16xf32>
    %63 = tpu.matmul %61, %62, %cst_19 {dimension_numbers = #tpu.dot_dimension_numbers<[1], [0], [0], [1], [0, 0, 1, 1], [], []>} : vector<16x16xbf16>, vector<16x16xbf16>, vector<16x16xf32> -> vector<16x16xf32>
    %64 = tpu.concatenate %34, %63 in 1 : vector<16x16xf32>, vector<16x16xf32> -> vector<16x32xf32>
    %c0_20 = arith.constant 0 : index
    %c0_21 = arith.constant 0 : index
    %65 = vector.load %arg4[%c0_20, %c0_21] : memref<1x32xf32, #tpu.memory_space<vmem>>, vector<1x32xf32>
    %66 = vector.broadcast %65 : vector<1x32xf32> to vector<16x32xf32>
    %67 = arith.addf %64, %66 : vector<16x32xf32>
    %cst_22 = arith.constant 0.000000e+00 : f32
    %68 = vector.broadcast %cst_22 : f32 to vector<16x32xf32>
    %69 = arith.maximumf %67, %68 : vector<16x32xf32>
    %c0_23 = arith.constant 0 : index
    %c0_24 = arith.constant 0 : index
    %70 = vector.load %arg5[%c0_23, %c0_24] : memref<32x256xf32, #tpu.memory_space<vmem>>, vector<32x256xf32>
    %cst_25 = arith.constant dense<0.000000e+00> : vector<16x256xf32>
    %71 = tpu.matmul %69, %70, %cst_25 {dimension_numbers = #tpu.dot_dimension_numbers<[1], [0], [0], [1], [0, 0, 1, 1], [], []>} : vector<16x32xf32>, vector<32x256xf32>, vector<16x256xf32> -> vector<16x256xf32>
    %72 = vector.extract_strided_slice %71 {offsets = [0, 0], sizes = [16, 8], strides = [1, 1]} : vector<16x256xf32> to vector<16x8xf32>
    %73 = vector.extract_strided_slice %71 {offsets = [0, 8], sizes = [16, 1], strides = [1, 1]} : vector<16x256xf32> to vector<16x1xf32>
    %74 = vector.extract_strided_slice %71 {offsets = [0, 9], sizes = [16, 1], strides = [1, 1]} : vector<16x256xf32> to vector<16x1xf32>
    %cst_26 = arith.constant dense<0.000000e+00> : vector<16x16xf32>
    %75 = tpu.matmul %2, %73, %cst_26 {dimension_numbers = #tpu.dot_dimension_numbers<[1], [1], [0], [0], [0, 0, 1, 0], [], []>} : vector<16x1xf32>, vector<16x1xf32>, vector<16x16xf32> -> vector<16x16xf32>
    %76 = vector.broadcast %74 : vector<16x1xf32> to vector<16x16xf32>
    %77 = arith.addf %76, %75 : vector<16x16xf32>
    %cst_27 = arith.constant 0.000000e+00 : f32
    %78 = vector.broadcast %cst_27 : f32 to vector<16x16xf32>
    %79 = arith.cmpf ogt, %77, %78 : vector<16x16xf32>
    %cst_28 = arith.constant 2.000000e-01 : f32
    %80 = vector.broadcast %cst_28 : f32 to vector<16x16xf32>
    %81 = arith.mulf %80, %77 : vector<16x16xf32>
    %82 = arith.select %79, %77, %81 : vector<16x16xi1>, vector<16x16xf32>
    %83 = arith.addf %82, %1 : vector<16x16xf32>
    %cst_29 = arith.constant dense<0xFF800000> : vector<16xf32>
    %84 = vector.multi_reduction <maximumf>, %83, %cst_29 [1] : vector<16x16xf32> to vector<16xf32>
    %85 = vector.shape_cast %84 : vector<16xf32> to vector<16x1xf32>
    %86 = vector.broadcast %85 : vector<16x1xf32> to vector<16x16xf32>
    %87 = arith.subf %83, %86 : vector<16x16xf32>
    %88 = math.exp %87 : vector<16x16xf32>
    %cst_30 = arith.constant dense<0.000000e+00> : vector<16xf32>
    %89 = vector.multi_reduction <add>, %88, %cst_30 [1] : vector<16x16xf32> to vector<16xf32>
    %90 = vector.shape_cast %89 : vector<16xf32> to vector<16x1xf32>
    %91 = tpu.reciprocal %90 {approx = true} : vector<16x1xf32> -> vector<16x1xf32>
    %92 = arith.mulf %90, %91 : vector<16x1xf32>
    %cst_31 = arith.constant 2.000000e+00 : f32
    %93 = vector.broadcast %cst_31 : f32 to vector<16x1xf32>
    %94 = arith.subf %93, %92 : vector<16x1xf32>
    %95 = arith.mulf %91, %94 : vector<16x1xf32>
    %96 = vector.broadcast %95 : vector<16x1xf32> to vector<16x16xf32>
    %97 = arith.mulf %88, %96 : vector<16x16xf32>
    %98 = vector.extract_strided_slice %71 {offsets = [0, 128], sizes = [16, 8], strides = [1, 1]} : vector<16x256xf32> to vector<16x8xf32>
    %99 = vector.extract_strided_slice %71 {offsets = [0, 136], sizes = [16, 1], strides = [1, 1]} : vector<16x256xf32> to vector<16x1xf32>
    %100 = vector.extract_strided_slice %71 {offsets = [0, 137], sizes = [16, 1], strides = [1, 1]} : vector<16x256xf32> to vector<16x1xf32>
    %cst_32 = arith.constant dense<0.000000e+00> : vector<16x16xf32>
    %101 = tpu.matmul %2, %99, %cst_32 {dimension_numbers = #tpu.dot_dimension_numbers<[1], [1], [0], [0], [0, 0, 1, 0], [], []>} : vector<16x1xf32>, vector<16x1xf32>, vector<16x16xf32> -> vector<16x16xf32>
    %102 = vector.broadcast %100 : vector<16x1xf32> to vector<16x16xf32>
    %103 = arith.addf %102, %101 : vector<16x16xf32>
    %cst_33 = arith.constant 0.000000e+00 : f32
    %104 = vector.broadcast %cst_33 : f32 to vector<16x16xf32>
    %105 = arith.cmpf ogt, %103, %104 : vector<16x16xf32>
    %cst_34 = arith.constant 2.000000e-01 : f32
    %106 = vector.broadcast %cst_34 : f32 to vector<16x16xf32>
    %107 = arith.mulf %106, %103 : vector<16x16xf32>
    %108 = arith.select %105, %103, %107 : vector<16x16xi1>, vector<16x16xf32>
    %109 = arith.addf %108, %1 : vector<16x16xf32>
    %cst_35 = arith.constant dense<0xFF800000> : vector<16xf32>
    %110 = vector.multi_reduction <maximumf>, %109, %cst_35 [1] : vector<16x16xf32> to vector<16xf32>
    %111 = vector.shape_cast %110 : vector<16xf32> to vector<16x1xf32>
    %112 = vector.broadcast %111 : vector<16x1xf32> to vector<16x16xf32>
    %113 = arith.subf %109, %112 : vector<16x16xf32>
    %114 = math.exp %113 : vector<16x16xf32>
    %cst_36 = arith.constant dense<0.000000e+00> : vector<16xf32>
    %115 = vector.multi_reduction <add>, %114, %cst_36 [1] : vector<16x16xf32> to vector<16xf32>
    %116 = vector.shape_cast %115 : vector<16xf32> to vector<16x1xf32>
    %117 = tpu.reciprocal %116 {approx = true} : vector<16x1xf32> -> vector<16x1xf32>
    %118 = arith.mulf %116, %117 : vector<16x1xf32>
    %cst_37 = arith.constant 2.000000e+00 : f32
    %119 = vector.broadcast %cst_37 : f32 to vector<16x1xf32>
    %120 = arith.subf %119, %118 : vector<16x1xf32>
    %121 = arith.mulf %117, %120 : vector<16x1xf32>
    %122 = vector.broadcast %121 : vector<16x1xf32> to vector<16x16xf32>
    %123 = arith.mulf %114, %122 : vector<16x16xf32>
    %124 = tpu.concatenate %97, %123 in 1 : vector<16x16xf32>, vector<16x16xf32> -> vector<16x32xf32>
    %125 = arith.truncf %124 : vector<16x32xf32> to vector<16x32xbf16>
    %126 = tpu.concatenate %72, %98 in 0 : vector<16x8xf32>, vector<16x8xf32> -> vector<32x8xf32>
    %127 = arith.truncf %126 : vector<32x8xf32> to vector<32x8xbf16>
    %cst_38 = arith.constant dense<0.000000e+00> : vector<16x8xf32>
    %128 = tpu.matmul %125, %127, %cst_38 {dimension_numbers = #tpu.dot_dimension_numbers<[1], [0], [0], [1], [0, 0, 1, 1], [], []>} : vector<16x32xbf16>, vector<32x8xbf16>, vector<16x8xf32> -> vector<16x8xf32>
    %cst_39 = arith.constant 5.000000e-01 : f32
    %129 = vector.broadcast %cst_39 : f32 to vector<16x8xf32>
    %130 = arith.mulf %128, %129 : vector<16x8xf32>
    %c0_40 = arith.constant 0 : index
    %c0_41 = arith.constant 0 : index
    %131 = vector.load %arg6[%c0_40, %c0_41] : memref<1x8xf32, #tpu.memory_space<vmem>>, vector<1x8xf32>
    %132 = vector.broadcast %131 : vector<1x8xf32> to vector<16x8xf32>
    %133 = arith.addf %130, %132 : vector<16x8xf32>
    %c0_42 = arith.constant 0 : index
    %c0_43 = arith.constant 0 : index
    %134 = vector.load %arg2[%c0_42, %c0_43] : memref<2x16xf32, #tpu.memory_space<vmem>>, vector<2x16xf32>
    %cst_44 = arith.constant dense<0.000000e+00> : vector<2x8xf32>
    %135 = tpu.matmul %134, %133, %cst_44 {dimension_numbers = #tpu.dot_dimension_numbers<[1], [0], [0], [1], [0, 0, 1, 1], [], []>} : vector<2x16xf32>, vector<16x8xf32>, vector<2x8xf32> -> vector<2x8xf32>
    %cst_45 = arith.constant 0.000000e+00 : f32
    %136 = vector.broadcast %cst_45 : f32 to vector<2x8xf32>
    %137 = arith.maximumf %135, %136 : vector<2x8xf32>
    %c0_46 = arith.constant 0 : index
    %c0_47 = arith.constant 0 : index
    %138 = vector.load %arg7[%c0_46, %c0_47] : memref<2x8xf32, #tpu.memory_space<vmem>>, vector<2x8xf32>
    tpu.vector_store %arg7[%c0_46, %c0_47], %137 {strides = array<i32>} : memref<2x8xf32, #tpu.memory_space<vmem>>, vector<2x8xf32>,
    return
  }
}

</mosaic_0001>

<bundles_post_ra>
// kernel: tpu_custom_call.1
= control target key start
LH: loop header
LB: loop body
LE: loop exit
PB: predicated region body
PF: predicated region fallthrough
CT: control target
= control target key end

     0   :  { %12 = vsyncpa [#allocation3], 0  ;;  %s910_s0 = inlined_call_operand.vmem [shape: f32[16,8], index: 0, kind: input, shape index: {}]   ;;  %s911_s1 = inlined_call_operand.vmem [shape: bf16[16,16], index: 1, kind: input, shape index: {}]   ;;  %s912_s2 = inlined_call_operand.vmem [shape: f32[2,16], index: 2, kind: input, shape index: {}]   ;;  %s913_s3 = inlined_call_operand.vmem [shape: f32[8,256], index: 3, kind: input, shape index: {}]   ;;  %s914_s4 = inlined_call_operand.vmem [shape: f32[1,32], index: 4, kind: input, shape index: {}]   ;;  %s915_s5 = inlined_call_operand.hbm [shape: f32[32,256], index: 5, kind: input, shape index: {}]   ;;  %s916_s6 = inlined_call_operand.vmem [shape: f32[1,8], index: 6, kind: input, shape index: {}]   ;;  %s917_s7 = inlined_call_operand.hbm [shape: f32[2,8], index: 7, kind: output, shape index: {}]  }
   0x1   :  { %13 = vsyncpa [#allocation4], 0  ;;  %s28_s26 = sshll.u32 %s915_s5, 4  ;;  %s763_s27 = smov [#allocation2]   ;;  %s29_s26 = int_to_ptr.hbm [resolvable:$true] %s28_s26 }
   0x2   :  { %s30_s28 = sshll.u32 %s763_s27, 4  ;;  %s764_s29 = smov 256   ;;  %s31_s28 = int_to_ptr.vmem [resolvable:$true] %s30_s28 }
   0x3   :  { %s765_s30 = smov 16  }
   0x4   :  { %36 = dma.hbm_to_vmem [thread:$0]  %s29_s26, 1024, %s31_s28, [#allocation3], %s764_s29, %s764_s29, %s765_s30  }
   0x5   :  { %759 = dma.done.wait [#allocation3], 1024  }
   0x6   :  { %760 = vsyncadd [#allocation3], 4294966272  ;;  %v766_v0 = vmov 17   ;;  %vm52_vm0 = vcmask 64512   ;;  %v50_v1 = vld [vmem:[%s913_s3] sm:$0xff]  ;;  %v51_v2 = vld [vmem:[%s913_s3 + $0x8] sm:$0xff] }
   0x7   :  { %666 = vset.pattern.permute.xlu2 %v766_v0  ;;  %667 = vset.pattern.permute.xlu0 %v766_v0  ;;  %v48_v3 = vld [vmem:[%s910_s0] sm:$0xff]  ;;  %v49_v4 = vld [vmem:[%s910_s0 + $0x8] sm:$0xff]  ;;  %s767_s3 = smov 112   ;;  %vm111_vm1 = vcmask 7168   ;;  %v768_v15 = vmov 1.0   ;;  %vm160_vm3 = vcmask 130048  }
   0x8   :  { %668 = vset.pattern.permute.xlu1 %v766_v0  ;;  %74 = vmatpush.msra.mxu0 %v50_v1  ;;  %v654_v17 = vld [vmem:[%s911_s1] sm:$0xff]   ;;  %vm332_vm7 = vcmask 261120   ;;  %s771_s21 = smov [#allocation5]   ;;  %s615_s25 = sshll.u32 %s917_s7, 4  ;;  %vm606_vm12 = vcmask 58368   ;;  %s616_s25 = int_to_ptr.hbm [resolvable:$true] %s615_s25 }
   0x9   :  { %97 = vmatpush.msra.mxu1 %v51_v2  ;;  %625 = vmatmul.msk.f32.vlgmr.msra.gmra.mxu0 %vm52_vm0, %v48_v3  ;;  %v843_v20 = vunpack.c.l.bf16 %v654_v17  ;;  %v847_v32 = vunpack.c.h.bf16 %v654_v17  ;;  %s613_s22 = sshll.u32 %s771_s21, 4  ;;  %s614_s22 = int_to_ptr.vmem [resolvable:$true] %s613_s22 }
   0xa   :  { %627 = vmatmul.msk.f32.vlgmr.msra.gmra.mxu1 %vm52_vm0, %v48_v3 }
  0x11   :  { %626 = vmatmul.msk.f32.gmra.mxu0 %vm52_vm0, %v49_v4 }
  0x12   :  { %628 = vmatmul.msk.f32.gmra.mxu1 %vm52_vm0, %v49_v4 }
  0x86   :  { %v76_v5 = vpop.f32.mrf.mxu0 }
  0x87   :  { %v99_v6 = vpop.f32.mrf.mxu1 }
  0x88   :  { %242 = vperm.xlu2 %666, %v99_v6  }
  0x8e   :  { %v79_v7 = vpop.f32.mrf.mxu0 }
  0x8f   :  { %v102_v8 = vpop.f32.mrf.mxu1  ;;  %109 = vrot.lane.b32.xlu1 %v79_v7, %s767_s3  ;;  %v190_v10 = vpack.c.bf16 %v79_v7, %v76_v5 }
  0x90   :  { %246 = vperm.xlu2 %666, %v102_v8   ;;  %212 = vrot.lane.b32.xlu0 %v102_v8, %s767_s3  ;;  %v288_v9 = vpack.c.bf16 %v102_v8, %v99_v6 }
  0x91   :  { %201 = vmatpush.bf16.msra.mxu3 %v190_v10 }
  0x92   :  { %299 = vmatpush.bf16.msrb.mxu1 %v288_v9 }
  0x97   :  { %107 = vrot.lane.b32.xlu1 %v76_v5, %s767_s3 }
  0x98   :  { %210 = vrot.lane.b32.xlu0 %v99_v6, %s767_s3 }
  0x9f   :  { %147 = vperm.xlu1 %668, %v79_v7  }
  0xa0   :  { %143 = vperm.xlu0 %667, %v76_v5  }
  0xe2   :  { %v243_v16 = vpop.permute.xlu2 %242 }
  0xea   :  { %v247_v26 = vpop.permute.xlu2 %246 }
 0x101   :  { %v110_v12 = vpop.permute.xlu1 %109 }
 0x102   :  { %v213_v11 = vpop.permute.xlu0 %212  ;;  %629 = vmatpush.xpose.msk.msra.mxu2 %vm111_vm1, %v110_v12 }
 0x103   :  { %634 = vmatpush.xpose.msk.msrb.mxu0 %vm111_vm1, %v213_v11 }
 0x109   :  { %v108_v14 = vpop.permute.xlu1 %107 }
 0x10a   :  { %v211_v13 = vpop.permute.xlu0 %210  ;;  %630 = vmatpush.xpose.msk.msra.mxu2 %vm111_vm1, %v108_v14 }
 0x10b   :  { %635 = vmatpush.xpose.msk.msrb.mxu0 %vm111_vm1, %v211_v13 }
 0x10d   :  { %631 = vmatmul.msk.f32.vlgmr.msra.gmra.mxu2 %vm111_vm1, %v768_v15 }
 0x10e   :  { %636 = vmatmul.msk.f32.vlgmr.msrb.gmra.mxu0 %vm111_vm1, %v768_v15 }
 0x111   :  { %v148_v38 = vpop.permute.xlu1 %147 }
 0x112   :  { %v144_v24 = vpop.permute.xlu0 %143 }
 0x115   :  { %632 = vmatmul.msk.f32.gmra.mxu2 %vm111_vm1, %v768_v15 }
 0x116   :  { %637 = vmatmul.msk.f32.gmra.mxu0 %vm111_vm1, %v768_v15 }
 0x18b   :  { %v235_v18 = vpop.f32.mrf.mxu0 }
 0x18c   :  { %v249_v19 = vadd.f32 %v243_v16, %v235_v18 }
 0x18e   :  { %vm251_vm2 = vcmp.gt.f32.partialorder %v249_v19, 0.0  ;;  %v253_v21 = vmul.f32 0.2, %v249_v19 }
 0x190   :  { %v255_v22 = vsel %vm251_vm2, %v249_v19, %v253_v21  ;;  %v136_v25 = vpop.f32.mrf.mxu2 }
 0x191   :  { %v257_v23 = vadd.f32 %v843_v20, %v255_v22  ;;  %v150_v27 = vadd.f32 %v144_v24, %v136_v25 }
 0x193   :  { %v238_v28 = vpop.f32.mrf.mxu0  ;;  %v259_v29 = vsel %vm160_vm3, %v257_v23, -inf  ;;  %vm152_vm4 = vcmp.gt.f32.partialorder %v150_v27, 0.0  ;;  %v154_v31 = vmul.f32 0.2, %v150_v27 }
 0x194   :  { %v250_v30 = vadd.f32 %v247_v26, %v238_v28  ;;  %260 = vmax.xlane.f32.xlu2 %v259_v29 }
 0x195   :  { %v156_v34 = vsel %vm152_vm4, %v150_v27, %v154_v31 }
 0x196   :  { %vm252_vm5 = vcmp.gt.f32.partialorder %v250_v30, 0.0  ;;  %v254_v33 = vmul.f32 0.2, %v250_v30  ;;  %v158_v35 = vadd.f32 %v843_v20, %v156_v34  ;;  %v330_v34 = vld [vmem:[#allocation2 + $0x30] sm:$0xff] }
 0x197   :  { %351 = vmatpush.msrb.mxu3 %v330_v34 }
 0x198   :  { %v256_v36 = vsel %vm252_vm5, %v250_v30, %v254_v33  ;;  %v139_v39 = vpop.f32.mrf.mxu2  ;;  %v161_v40 = vsel %vm160_vm3, %v158_v35, -inf }
 0x199   :  { %v258_v37 = vadd.f32 %v847_v32, %v256_v36  ;;  %v151_v41 = vadd.f32 %v148_v38, %v139_v39  ;;  %162 = vmax.xlane.f32.xlu0 %v161_v40  ;;  %v328_v36 = vld [vmem:[#allocation2 + $0x20] sm:$0xff]  ;;  %v326_v38 = vld [vmem:[#allocation2 + $0x10] sm:$0xff]  ;;  %v327_v39 = vld [vmem:[#allocation2 + $0x18] sm:$0xff] }
 0x19a   :  { %352 = vmatpush.msrb.mxu3 %v328_v36  ;;  %v324_v40 = vld [vmem:[#allocation2] sm:$0xff] }
 0x19b   :  { %v262_v42 = vsel %vm160_vm3, %v258_v37, -inf  ;;  %vm153_vm6 = vcmp.gt.f32.partialorder %v151_v41, 0.0  ;;  %v155_v43 = vmul.f32 0.2, %v151_v41 }
 0x19c   :  { %263 = vmax.xlane.f32.xlu1 %v262_v42  ;;  %353 = vmatpush.msrb.mxu3 %v326_v38 }
 0x19d   :  { %v157_v44 = vsel %vm153_vm6, %v151_v41, %v155_v43  ;;  %v325_v41 = vld [vmem:[#allocation2 + $0x8] sm:$0xff]  ;;  %v677_v43 = vld [vmem:[%s914_s4] ss:$0 sm:$0xff]  ;;  %s770_s4 = smov 120  }
 0x19e   :  { %v159_v45 = vadd.f32 %v847_v32, %v157_v44  ;;  %354 = vmatpush.msrb.mxu3 %v324_v40 }
 0x1a0   :  { %v164_v46 = vsel %vm160_vm3, %v159_v45, -inf }
 0x1a1   :  { %165 = vmax.xlane.f32.xlu2 %v164_v46 }
 0x207   :  { %v261_v47 = vpop.xlane.xlu2 %260 }
 0x208   :  { %v265_v48 = vsub.f32 %v257_v23, %v261_v47 }
 0x20a   :  { %v267_v49 = vmul.f32 1.442695, %v265_v48 }
 0x20c   :  { %679 = vpow2.f32 %v267_v49  ;;  %v163_v50 = vpop.xlane.xlu0 %162 }
 0x20d   :  { %v167_v51 = vsub.f32 %v158_v35, %v163_v50  ;;  %v331_v35 = vld [vmem:[#allocation2 + $0x38] sm:$0xff] }
 0x20e   :  { %374 = vmatpush.msrb.mxu2 %v331_v35 }
 0x20f   :  { %v264_v52 = vpop.xlane.xlu1 %263  ;;  %v169_v54 = vmul.f32 1.442695, %v167_v51 }
 0x210   :  { %v266_v53 = vsub.f32 %v258_v37, %v264_v52  ;;  %v329_v37 = vld [vmem:[#allocation2 + $0x28] sm:$0xff] }
 0x211   :  { %681 = vpow2.f32 %v169_v54  ;;  %375 = vmatpush.msrb.mxu2 %v329_v37 }
 0x212   :  { %v680_v55 = vpop.eup %679  ;;  %v269_v56 = vmul.f32 1.442695, %v266_v53  ;;  %v769_v53 = vmov 9  }
 0x213   :  { %v271_v57 = vsel %vm160_vm3, %v680_v55, 0.0  ;;  %376 = vmatpush.msrb.mxu2 %v327_v39  ;;  %671 = vset.pattern.permute.xlu2 %v769_v53 }
 0x214   :  { %683 = vpow2.f32 %v269_v56  ;;  %272 = vadd.xlane.f32.xlu2 %v271_v57  ;;  %v166_v58 = vpop.xlane.xlu2 %165  ;;  %669 = vset.pattern.permute.xlu1 %v769_v53 }
 0x215   :  { %v168_v59 = vsub.f32 %v159_v45, %v166_v58  ;;  %377 = vmatpush.msrb.mxu2 %v325_v41  ;;  %670 = vset.pattern.permute.xlu0 %v769_v53 }
 0x217   :  { %v682_v60 = vpop.eup %681  ;;  %v171_v61 = vmul.f32 1.442695, %v168_v59 }
 0x218   :  { %v173_v0 = vsel %vm160_vm3, %v682_v60, 0.0 }
 0x219   :  { %685 = vpow2.f32 %v171_v61 }
 0x21a   :  { %v684_v62 = vpop.eup %683 }
 0x21b   :  { %v274_v63 = vsel %vm160_vm3, %v684_v62, 0.0 }
 0x21c   :  { %275 = vadd.xlane.f32.xlu1 %v274_v63  ;;  %174 = vadd.xlane.f32.xlu2 %v173_v0 }
 0x21f   :  { %v686_v1 = vpop.eup %685 }
 0x220   :  { %v176_v2 = vsel %vm160_vm3, %v686_v1, 0.0 }
 0x221   :  { %177 = vadd.xlane.f32.xlu0 %v176_v2 }
 0x287   :  { %v273_v3 = vpop.xlane.xlu2 %272 }
 0x288   :  { %687 = vrcp.f32 %v273_v3 }
 0x28e   :  { %v688_v4 = vpop.eup %687 }
 0x28f   :  { %v276_v5 = vpop.xlane.xlu1 %275  ;;  %v175_v6 = vpop.xlane.xlu2 %174  ;;  %v279_v7 = vmul.f32 %v688_v4, %v273_v3 }
 0x290   :  { %689 = vrcp.f32 %v276_v5 }
 0x291   :  { %691 = vrcp.f32 %v175_v6  ;;  %v281_v8 = vsub.f32 2.0, %v279_v7 }
 0x293   :  { %v283_v14 = vmul.f32 %v688_v4, %v281_v8 }
 0x294   :  { %v178_v10 = vpop.xlane.xlu0 %177 }
 0x295   :  { %693 = vrcp.f32 %v178_v10  ;;  %v285_v21 = vmul.f32 %v680_v55, %v283_v14 }
 0x296   :  { %v690_v9 = vpop.eup %689 }
 0x297   :  { %v692_v11 = vpop.eup %691  ;;  %v280_v12 = vmul.f32 %v690_v9, %v276_v5 }
 0x298   :  { %v181_v13 = vmul.f32 %v692_v11, %v175_v6 }
 0x299   :  { %v282_v16 = vsub.f32 2.0, %v280_v12 }
 0x29a   :  { %v183_v18 = vsub.f32 2.0, %v181_v13 }
 0x29b   :  { %v284_v17 = vmul.f32 %v690_v9, %v282_v16  ;;  %v694_v19 = vpop.eup %693 }
 0x29c   :  { %v182_v23 = vmul.f32 %v694_v19, %v178_v10  ;;  %v185_v25 = vmul.f32 %v692_v11, %v183_v18 }
 0x29d   :  { %v286_v22 = vmul.f32 %v684_v62, %v284_v17 }
 0x29e   :  { %v184_v26 = vsub.f32 2.0, %v182_v23  ;;  %v187_v28 = vmul.f32 %v682_v60, %v185_v25 }
 0x29f   :  { %v287_v24 = vpack.c.bf16 %v286_v22, %v285_v21 }
 0x2a0   :  { %v186_v27 = vmul.f32 %v694_v19, %v184_v26 }
 0x2a1   :  { %638 = vmatmul.msk.bf16.vlgmr.msrb.gmra.mxu1 %vm160_vm3, %v287_v24 }
 0x2a2   :  { %v188_v29 = vmul.f32 %v686_v1, %v186_v27 }
 0x2a4   :  { %v189_v30 = vpack.c.bf16 %v188_v29, %v187_v28 }
 0x2a6   :  { %633 = vmatmul.msk.bf16.vlgmr.msra.gmra.mxu3 %vm160_vm3, %v189_v30 }
 0x31e   :  { %v301_v31 = vpop.f32.mrf.mxu1 }
 0x31f   :  { %308 = vrot.lane.b32.xlu1 %v301_v31, %s765_s30 }
 0x326   :  { %v303_v33 = vpop.f32.mrf.mxu1 }
 0x327   :  { %310 = vrot.lane.b32.xlu2 %v303_v33, %s765_s30 }
 0x329   :  { %v203_v42 = vpop.f32.mrf.mxu3 }
 0x331   :  { %v205_v48 = vpop.f32.mrf.mxu3 }
 0x381   :  { %v311_v46 = vpop.permute.xlu2 %310 }
 0x382   :  { %v315_v50 = vsel %vm160_vm3, %v205_v48, %v311_v46 }
 0x383   :  { %v321_v51 = vadd.f32 %v677_v43, %v315_v50 }
 0x385   :  { %v323_v52 = vmax.f32 %v321_v51, 0.0 }
 0x391   :  { %v309_v44 = vpop.permute.xlu1 %308 }
 0x392   :  { %v314_v45 = vsel %vm160_vm3, %v203_v42, %v309_v44 }
 0x393   :  { %v320_v47 = vadd.f32 %v677_v43, %v314_v45 }
 0x395   :  { %v322_v49 = vmax.f32 %v320_v47, 0.0 }
 0x397   :  { %639 = vmatmul.msk.f32.vlgmr.msrb.gmra.mxu3 %vm332_vm7, %v322_v49  ;;  %641 = vmatmul.msk.f32.vlgmr.msrb.gmra.mxu2 %vm332_vm7, %v322_v49 }
 0x39f   :  { %640 = vmatmul.msk.f32.gmra.mxu3 %vm332_vm7, %v323_v52  ;;  %642 = vmatmul.msk.f32.gmra.mxu2 %vm332_vm7, %v323_v52 }
 0x41a   :  { %v356_v54 = vpop.f32.mrf.mxu3  ;;  %v379_v55 = vpop.f32.mrf.mxu2 }
 0x41b   :  { %466 = vrot.lane.b32.xlu1 %v379_v55, %s770_s4  ;;  %387 = vrot.lane.b32.xlu2 %v356_v54, %s770_s4 }
 0x422   :  { %v382_v56 = vpop.f32.mrf.mxu2  ;;  %v359_v58 = vpop.f32.mrf.mxu3 }
 0x423   :  { %v555_v57 = vpack.c.bf16 %v382_v56, %v379_v55  ;;  %498 = vperm.xlu1 %669, %v379_v55   ;;  %419 = vperm.xlu2 %671, %v356_v54   ;;  %v554_v59 = vpack.c.bf16 %v359_v58, %v356_v54 }
 0x424   :  { %468 = vrot.lane.b32.xlu0 %v382_v56, %s770_s4 }
 0x425   :  { %565 = vmatpush.bf16.msra.mxu3 %v555_v57 }
 0x429   :  { %566 = vmatpush.bf16.msra.mxu3 %v554_v59 }
 0x42b   :  { %423 = vperm.xlu1 %669, %v359_v58  }
 0x42c   :  { %389 = vrot.lane.b32.xlu0 %v359_v58, %s770_s4 }
 0x434   :  { %502 = vperm.xlu0 %670, %v382_v56  }
 0x475   :  { %v388_v63 = vpop.permute.xlu2 %387 }
 0x47d   :  { %v420_v6 = vpop.permute.xlu2 %419 }
 0x48d   :  { %v467_v61 = vpop.permute.xlu1 %466 }
 0x495   :  { %v499_v0 = vpop.permute.xlu1 %498 }
 0x496   :  { %v469_v60 = vpop.permute.xlu0 %468 }
 0x497   :  { %647 = vmatpush.xpose.msk.msra.mxu1 %vm111_vm1, %v469_v60 }
 0x49b   :  { %648 = vmatpush.xpose.msk.msra.mxu1 %vm111_vm1, %v467_v61 }
 0x49d   :  { %v424_v19 = vpop.permute.xlu1 %423 }
 0x49e   :  { %649 = vmatmul.msk.f32.vlgmr.msra.gmra.mxu1 %vm111_vm1, %v768_v15  ;;  %v390_v62 = vpop.permute.xlu0 %389 }
 0x49f   :  { %643 = vmatpush.xpose.msk.msra.mxu0 %vm111_vm1, %v390_v62 }
 0x4a3   :  { %644 = vmatpush.xpose.msk.msra.mxu0 %vm111_vm1, %v388_v63 }
 0x4a6   :  { %645 = vmatmul.msk.f32.vlgmr.msra.gmra.mxu0 %vm111_vm1, %v768_v15  ;;  %650 = vmatmul.msk.f32.gmra.mxu1 %vm111_vm1, %v768_v15  ;;  %v503_v7 = vpop.permute.xlu0 %502 }
 0x4ae   :  { %646 = vmatmul.msk.f32.gmra.mxu0 %vm111_vm1, %v768_v15 }
 0x51b   :  { %v491_v1 = vpop.f32.mrf.mxu1 }
 0x51c   :  { %v505_v2 = vadd.f32 %v499_v0, %v491_v1 }
 0x51e   :  { %vm507_vm8 = vcmp.gt.f32.partialorder %v505_v2, 0.0  ;;  %v509_v3 = vmul.f32 0.2, %v505_v2 }
 0x520   :  { %v511_v4 = vsel %vm507_vm8, %v505_v2, %v509_v3 }
 0x521   :  { %v513_v5 = vadd.f32 %v843_v20, %v511_v4 }
 0x523   :  { %v412_v8 = vpop.f32.mrf.mxu0  ;;  %v494_v9 = vpop.f32.mrf.mxu1  ;;  %v515_v10 = vsel %vm160_vm3, %v513_v5, -inf }
 0x524   :  { %v426_v11 = vadd.f32 %v420_v6, %v412_v8  ;;  %v506_v12 = vadd.f32 %v503_v7, %v494_v9  ;;  %516 = vmax.xlane.f32.xlu2 %v515_v10 }
 0x526   :  { %vm428_vm9 = vcmp.gt.f32.partialorder %v426_v11, 0.0  ;;  %v430_v13 = vmul.f32 0.2, %v426_v11  ;;  %vm508_vm10 = vcmp.gt.f32.partialorder %v506_v12, 0.0  ;;  %v510_v15 = vmul.f32 0.2, %v506_v12 }
 0x528   :  { %v432_v14 = vsel %vm428_vm9, %v426_v11, %v430_v13  ;;  %v512_v16 = vsel %vm508_vm10, %v506_v12, %v510_v15 }
 0x529   :  { %v434_v17 = vadd.f32 %v843_v20, %v432_v14  ;;  %v514_v18 = vadd.f32 %v847_v32, %v512_v16 }
 0x52b   :  { %v415_v21 = vpop.f32.mrf.mxu0  ;;  %v436_v22 = vsel %vm160_vm3, %v434_v17, -inf  ;;  %v518_v23 = vsel %vm160_vm3, %v514_v18, -inf }
 0x52c   :  { %v427_v24 = vadd.f32 %v424_v19, %v415_v21  ;;  %437 = vmax.xlane.f32.xlu0 %v436_v22  ;;  %519 = vmax.xlane.f32.xlu1 %v518_v23  ;;  %v581_v23 = vld [vmem:[%s912_s2] sm:$0x3] }
 0x52e   :  { %vm429_vm11 = vcmp.gt.f32.partialorder %v427_v24, 0.0  ;;  %v431_v25 = vmul.f32 0.2, %v427_v24 }
 0x530   :  { %v433_v26 = vsel %vm429_vm11, %v427_v24, %v431_v25 }
 0x531   :  { %v435_v27 = vadd.f32 %v847_v32, %v433_v26 }
 0x533   :  { %v439_v28 = vsel %vm160_vm3, %v435_v27, -inf }
 0x534   :  { %440 = vmax.xlane.f32.xlu2 %v439_v28 }
 0x597   :  { %v517_v20 = vpop.xlane.xlu2 %516 }
 0x598   :  { %v521_v29 = vsub.f32 %v513_v5, %v517_v20 }
 0x59a   :  { %v523_v30 = vmul.f32 1.442695, %v521_v29 }
 0x59c   :  { %695 = vpow2.f32 %v523_v30 }
 0x59f   :  { %v520_v31 = vpop.xlane.xlu1 %519  ;;  %v438_v33 = vpop.xlane.xlu0 %437 }
 0x5a0   :  { %v522_v34 = vsub.f32 %v514_v18, %v520_v31  ;;  %v442_v35 = vsub.f32 %v434_v17, %v438_v33  ;;  %v678_v18 = vld [vmem:[%s916_s6] ss:$0 sm:$0xff] }
 0x5a2   :  { %v696_v36 = vpop.eup %695  ;;  %v525_v37 = vmul.f32 1.442695, %v522_v34  ;;  %v444_v38 = vmul.f32 1.442695, %v442_v35 }
 0x5a3   :  { %v527_v39 = vsel %vm160_vm3, %v696_v36, 0.0 }
 0x5a4   :  { %697 = vpow2.f32 %v525_v37  ;;  %528 = vadd.xlane.f32.xlu1 %v527_v39 }
 0x5a5   :  { %699 = vpow2.f32 %v444_v38 }
 0x5a7   :  { %v441_v32 = vpop.xlane.xlu2 %440 }
 0x5a8   :  { %v443_v40 = vsub.f32 %v435_v27, %v441_v32 }
 0x5aa   :  { %v698_v41 = vpop.eup %697  ;;  %v446_v42 = vmul.f32 1.442695, %v443_v40 }
 0x5ab   :  { %v700_v43 = vpop.eup %699  ;;  %v530_v44 = vsel %vm160_vm3, %v698_v41, 0.0 }
 0x5ac   :  { %701 = vpow2.f32 %v446_v42  ;;  %531 = vadd.xlane.f32.xlu0 %v530_v44  ;;  %v448_v45 = vsel %vm160_vm3, %v700_v43, 0.0 }
 0x5ad   :  { %449 = vadd.xlane.f32.xlu2 %v448_v45 }
 0x5b2   :  { %v702_v46 = vpop.eup %701 }
 0x5b3   :  { %v451_v47 = vsel %vm160_vm3, %v702_v46, 0.0 }
 0x5b4   :  { %452 = vadd.xlane.f32.xlu1 %v451_v47 }
 0x617   :  { %v529_v48 = vpop.xlane.xlu1 %528 }
 0x618   :  { %703 = vrcp.f32 %v529_v48 }
 0x61e   :  { %v704_v49 = vpop.eup %703 }
 0x61f   :  { %v532_v50 = vpop.xlane.xlu0 %531  ;;  %v535_v51 = vmul.f32 %v704_v49, %v529_v48 }
 0x620   :  { %705 = vrcp.f32 %v532_v50  ;;  %v450_v61 = vpop.xlane.xlu2 %449 }
 0x621   :  { %v537_v52 = vsub.f32 2.0, %v535_v51  ;;  %707 = vrcp.f32 %v450_v61 }
 0x623   :  { %v539_v55 = vmul.f32 %v704_v49, %v537_v52 }
 0x625   :  { %v541_v58 = vmul.f32 %v696_v36, %v539_v55 }
 0x626   :  { %v706_v53 = vpop.eup %705 }
 0x627   :  { %v536_v54 = vmul.f32 %v706_v53, %v532_v50  ;;  %v453_v62 = vpop.xlane.xlu1 %452  ;;  %v708_v63 = vpop.eup %707 }
 0x628   :  { %709 = vrcp.f32 %v453_v62  ;;  %v456_v1 = vmul.f32 %v708_v63, %v450_v61 }
 0x629   :  { %v538_v56 = vsub.f32 2.0, %v536_v54 }
 0x62a   :  { %v458_v3 = vsub.f32 2.0, %v456_v1 }
 0x62b   :  { %v540_v57 = vmul.f32 %v706_v53, %v538_v56 }
 0x62c   :  { %v460_v5 = vmul.f32 %v708_v63, %v458_v3 }
 0x62d   :  { %v542_v59 = vmul.f32 %v698_v41, %v540_v57 }
 0x62e   :  { %v710_v0 = vpop.eup %709  ;;  %v462_v8 = vmul.f32 %v700_v43, %v460_v5 }
 0x62f   :  { %v672_v60 = vpack.i.bf16 %v542_v59, %v541_v58  ;;  %v457_v2 = vmul.f32 %v710_v0, %v453_v62 }
 0x631   :  { %673 = vrot.lane.b32.xlu0 %v672_v60, %s765_s30  ;;  %v459_v4 = vsub.f32 2.0, %v457_v2 }
 0x633   :  { %v461_v6 = vmul.f32 %v710_v0, %v459_v4 }
 0x635   :  { %v463_v9 = vmul.f32 %v702_v46, %v461_v6 }
 0x6a3   :  { %v674_v7 = vpop.permute.xlu0 %673 }
 0x6a4   :  { %v676_v10 = vunpack.i.h.bf16 %v674_v7  ;;  %v675_v11 = vunpack.i.l.bf16 %v674_v7 }
 0x6a6   :  { %v552_v12 = vsel %vm160_vm3, %v463_v9, %v676_v10  ;;  %v551_v13 = vsel %vm160_vm3, %v462_v8, %v675_v11 }
 0x6a7   :  { %v553_v15 = vpack.c.bf16 %v552_v12, %v551_v13 }
 0x6a9   :  { %651 = vmatmul.msk.bf16.vlgmr.msra.gmra.mxu3 %vm332_vm7, %v553_v15 }
 0x72c   :  { %v568_v14 = vpop.f32.mrf.mxu3 }
 0x72d   :  { %v573_v17 = vmul.f32 0.5, %v568_v14 }
 0x72f   :  { %v579_v22 = vadd.f32 %v678_v18, %v573_v17 }
 0x734   :  { %v570_v16 = vpop.f32.mrf.mxu3 }
 0x735   :  { %v574_v19 = vmul.f32 0.5, %v570_v16 }
 0x737   :  { %v580_v21 = vadd.f32 %v678_v18, %v574_v19 }
 0x739   :  { %599 = vmatpush.msra.mxu2 %v580_v21 }
 0x73b   :  { %600 = vmatpush.msra.mxu2 %v579_v22 }
 0x73c   :  { %652 = vmatmul.msk.f32.vlgmr.msra.gmra.mxu2 %vm160_vm3, %v581_v23 }
 0x7bf   :  { %v602_v24 = vpop.f32.mrf.mxu2 }
 0x7c0   :  { %v605_v25 = vmax.f32 %v602_v24, 0.0 }
 0x7c2   :  { %607 = vst.msk [vmem:[#allocation5] sm:$0x3] %vm606_vm12, %v605_v25 }
 0x7c3   :  { %618 = dma.vmem_to_hbm [thread:$0]  %s614_s22, 32, %s616_s25, [#allocation4]  }
 0x7c4   :  { %761 = dma.done.wait [#allocation4], 32  }
 0x7c5   :  { %762 = vsyncadd [#allocation4], 4294967264 }
 0x7c6   :  { %623 = vsyncpa [#allocation3], 1 }
 0x7c7   :  { %624 = vsyncpa [#allocation4], 1 }

</bundles_post_ra>
